<compile_context>
chip_gen: v5e
topology: v5e:2x2
jax: 0.10.0
libtpu: 0.0.40
codegen_flags: <defaults>
</compile_context>

<pallas_src>
import functools
import math

import jax
import jax.numpy as jnp
import numpy as np
from jax import lax
from jax.experimental import pallas as pl
from jax.experimental.pallas import tpu as pltpu

LANE = 128
SUBLANE = 8


def _round_up(x, m):
    return (x + m - 1) // m * m


def _pick_tile_h(N, H, W, Cin, Cout_p, pad):
    """Output rows per grid step.

    Prefer TH with TH*W a multiple of 128 (lane-dense unmasked output stores),
    keep the per-step VMEM footprint small (v7x: 64 MiB VMEM per TensorCore),
    and keep >= 4 grid steps so the 'parallel' grid load-balances across two
    TensorCores (v7x) / the megacore (v5e/v6e).
    """
    th_unit = LANE // math.gcd(W, LANE)
    if th_unit > H:
        # Fallback: a single tile over H (output block = full last dim; legal,
        # stores are masked but correctness is unaffected).
        return H

    wp = W + 2 * pad

    def step_bytes(th):
        in_b = Cin * _round_up(th + 2 * pad, SUBLANE) * _round_up(wp, LANE) * 4
        out_b = Cout_p * _round_up(th * W, LANE) * 4
        return in_b + out_b

    th = th_unit
    while True:
        nxt = th * 2
        if nxt > H:
            break
        if N * ((H + nxt - 1) // nxt) < 4:        # keep >= 4 grid steps
            break
        if step_bytes(nxt) > 8 * 1024 * 1024:     # cap per-step footprint
            break
        th = nxt
    return th


def _conv_tap_kernel(x_ref, w_ref, b_ref, o_ref, *, K, TH, W, Cin, Cout_p):
    """One (batch, row-tile) step of the KxK stride-1 convolution.

    x_ref: (Cin, TH + 2*pad, W + 2*pad)  halo'd, reflection-padded input rows
    w_ref: (K*K, Cout_p, Cin)            conv weights (VMEM-resident)
    b_ref: (Cout_p, 1)                   conv bias    (VMEM-resident)
    o_ref: (Cout_p, TH*W)                output tile, pixel axis lane-dense
    """
    x = x_ref[...]
    wts = w_ref[...]
    acc = jnp.zeros((Cout_p, TH * W), dtype=jnp.float32)
    # In-kernel "im2col": K*K taps, each a (Cout_p, Cin) @ (Cin, TH*W) MXU dot.
    # Tap slices/reshapes are VMEM-local only (no HBM amplification).
    for kh in range(K):
        for kw in range(K):
            x_tap = x[:, kh:kh + TH, kw:kw + W].reshape(Cin, TH * W)
            acc = acc + jnp.dot(wts[kh * K + kw], x_tap,
                                preferred_element_type=jnp.float32)
    # norm_type='none', relu_type='none' -> identity after the bias add.
    o_ref[...] = (acc + b_ref[...]).astype(o_ref.dtype)


@functools.partial(jax.jit, static_argnames="kernel_size")
def conv_layer_forward(x_nchw, weight_oihw, bias, kernel_size=3):
    """ConvLayer forward (scale='none', norm='none', relu='none', use_pad=True).

    x_nchw:      (N, Cin, H, W)     float32
    weight_oihw: (Cout, Cin, K, K)  float32 (PyTorch conv weight layout)
    bias:        (Cout,)            float32
    returns:     (N, Cout, H, W)    float32
    """
    N, Cin, H, W = x_nchw.shape
    Cout = weight_oihw.shape[0]
    K = kernel_size
    pad = K // 2          # ReflectionPad2d(K//2); matches PyTorch for odd K
    Wp = W + 2 * pad

    Cout_p = _round_up(Cout, SUBLANE)
    TH = _pick_tile_h(N, H, W, Cin, Cout_p, pad)
    nH = -(-H // TH)
    H_pad = nH * TH

    # --- wrapper glue (stays NCHW end-to-end; no NHWC round trips) ----------
    # Width reflection pad only; the height reflection pad + halo rows are
    # folded into the static row-gather indices below.
    # TODO(synk): the remaining W-pad + row gather could also be fused into
    # the kernel with manual halo DMAs if profiling ever shows them exposed.
    x_w = jnp.pad(x_nchw, ((0, 0), (0, 0), (0, 0), (pad, pad)), mode="reflect")

    # padded-image row j -> original row (reflect at both borders; clamp for
    # the H_pad overhang rows whose outputs are cropped anyway).
    j = np.arange(H_pad + 2 * pad) - pad
    j = np.abs(j)
    j = np.where(j >= H, 2 * (H - 1) - j, j)
    j = np.clip(j, 0, H - 1)
    rows = j[np.arange(nH)[:, None] * TH + np.arange(TH + 2 * pad)[None, :]]

    # Halo'd row tiles: (N, Cin, nH, TH+2*pad, Wp).
    x_tiles = x_w[:, :, jnp.asarray(rows, dtype=jnp.int32), :]

    # Weight layout: tap index = kh*K + kw, then (Cout_p, Cin).
    w_col = jnp.transpose(weight_oihw, (2, 3, 0, 1)).reshape(K * K, Cout, Cin)
    w_col = jnp.pad(w_col, ((0, 0), (0, Cout_p - Cout), (0, 0)))
    b_col = jnp.pad(bias, (0, Cout_p - Cout)).reshape(Cout_p, 1)

    kernel = functools.partial(_conv_tap_kernel, K=K, TH=TH, W=W,
                               Cin=Cin, Cout_p=Cout_p)

    # VMEM budget: double-buffered in/out tiles + resident weights (+slack),
    # clamped to [32, 64] MiB so it is safe on v7x's 64 MiB per-core VMEM.
    in_block = Cin * _round_up(TH + 2 * pad, SUBLANE) * _round_up(Wp, LANE) * 4
    out_block = Cout_p * _round_up(TH * W, LANE) * 4
    w_bytes = K * K * _round_up(Cout_p, SUBLANE) * _round_up(Cin, LANE) * 4
    vmem_limit = int(min(64 * 1024 * 1024,
                         max(32 * 1024 * 1024,
                             3 * (in_block + out_block) + 2 * w_bytes)))

    cost = pl.CostEstimate(
        flops=2 * N * H * W * K * K * Cin * Cout,
        transcendentals=0,
        bytes_accessed=4 * (int(x_tiles.size) + int(w_col.size)
                            + int(b_col.size) + N * Cout * H * W))

    out = pl.pallas_call(
        kernel,
        out_shape=jax.ShapeDtypeStruct((N, Cout_p, nH * TH * W), x_nchw.dtype),
        grid=(N, nH),
        in_specs=[
            pl.BlockSpec((None, Cin, None, TH + 2 * pad, Wp),
                         lambda n, t: (n, 0, t, 0, 0)),
            pl.BlockSpec((K * K, Cout_p, Cin), lambda n, t: (0, 0, 0)),  # resident
            pl.BlockSpec((Cout_p, 1), lambda n, t: (0, 0)),              # resident
        ],
        out_specs=pl.BlockSpec((None, Cout_p, TH * W), lambda n, t: (n, 0, t)),
        compiler_params=pltpu.CompilerParams(
            dimension_semantics=("parallel", "parallel"),
            vmem_limit_bytes=vmem_limit),
        cost_estimate=cost,
    )(x_tiles, w_col, b_col)

    # (N, Cout_p, H_pad*W) -> NCHW; crop channel / row padding (no transpose).
    out = out.reshape(N, Cout_p, H_pad, W)[:, :Cout, :H, :]
    return out


def _reference(x_nchw, weight_oihw, bias, kernel_size=3):
    pad = kernel_size // 2
    x_pad = jnp.pad(x_nchw, ((0, 0), (0, 0), (pad, pad), (pad, pad)),
                    mode="reflect")
    y = lax.conv_general_dilated(
        x_pad, weight_oihw, window_strides=(1, 1), padding="VALID",
        dimension_numbers=("NCHW", "OIHW", "NCHW"))
    return y + bias[None, :, None, None]


if __name__ == "__main__":
    # Small shapes consistent with the module: N=2, Cin=4, H=W=16, Cout=8.
    N, Cin, H, W = 2, 4, 16, 16
    Cout, K = 8, 3

    key = jax.random.PRNGKey(0)
    kx, kw_, kb = jax.random.split(key, 3)

    x = jax.random.normal(kx, (N, Cin, H, W), dtype=jnp.float32)
    fan_in = Cin * K * K
    bound = 1.0 / np.sqrt(fan_in)
    weight = jax.random.uniform(kw_, (Cout, Cin, K, K), dtype=jnp.float32,
                                minval=-bound, maxval=bound)
    bias = jax.random.uniform(kb, (Cout,), dtype=jnp.float32,
                              minval=-bound, maxval=bound)

    out = jax.block_until_ready(conv_layer_forward(x, weight, bias,
                                                   kernel_size=K))
    ref = jax.block_until_ready(_reference(x, weight, bias, kernel_size=K))
    np.testing.assert_allclose(np.asarray(out), np.asarray(ref),
                               rtol=1e-4, atol=1e-4)
    print("KERNEL_OK")
</pallas_src>

<mosaic_0001>
module attributes {stable_mosaic.version = 11 : i64} {
  func.func @_conv_tap_kernel(%arg0: i32, %arg1: i32, %arg2: memref<1x4x1x10x18xf32, #tpu.memory_space<vmem>>, %arg3: memref<9x8x4xf32, #tpu.memory_space<vmem>>, %arg4: memref<8x1xf32, #tpu.memory_space<vmem>>, %arg5: memref<1x8x128xf32, #tpu.memory_space<vmem>>) attributes {dimension_semantics = [#tpu.dimension_semantics<parallel>, #tpu.dimension_semantics<parallel>], iteration_bounds = array<i64: 2, 2>, scalar_prefetch = 0 : i64, scratch_operands = 0 : i64, tpu.core_type = #tpu.core_type<tc>, window_params = [{transform_indices = @transform_0, window_bounds = array<i64: 1, 4, 1, 10, 18>}, {pipeline_mode = #tpu.pipeline_mode<synchronous>, transform_indices = @transform_1, window_bounds = array<i64: 9, 8, 4>}, {pipeline_mode = #tpu.pipeline_mode<synchronous>, transform_indices = @transform_2, window_bounds = array<i64: 8, 1>}, {transform_indices = @transform_3, window_bounds = array<i64: 1, 8, 128>}]} {
    %c0 = arith.constant 0 : index
    %c0_0 = arith.constant 0 : index
    %c0_1 = arith.constant 0 : index
    %c0_2 = arith.constant 0 : index
    %c0_3 = arith.constant 0 : index
    %0 = vector.load %arg2[%c0, %c0_0, %c0_1, %c0_2, %c0_3] : memref<1x4x1x10x18xf32, #tpu.memory_space<vmem>>, vector<1x4x1x10x18xf32>
    %1 = vector.shape_cast %0 : vector<1x4x1x10x18xf32> to vector<4x10x18xf32>
    %c0_4 = arith.constant 0 : index
    %c0_5 = arith.constant 0 : index
    %c0_6 = arith.constant 0 : index
    %2 = vector.load %arg3[%c0_4, %c0_5, %c0_6] : memref<9x8x4xf32, #tpu.memory_space<vmem>>, vector<9x8x4xf32>
    %cst = arith.constant 0.000000e+00 : f32
    %3 = vector.broadcast %cst : f32 to vector<8x128xf32>
    %4 = vector.extract_strided_slice %1 {offsets = [0, 0, 0], sizes = [4, 8, 16], strides = [1, 1, 1]} : vector<4x10x18xf32> to vector<4x8x16xf32>
    %5 = vector.shape_cast %4 : vector<4x8x16xf32> to vector<4x128xf32>
    %6 = vector.extract_strided_slice %2 {offsets = [0, 0, 0], sizes = [1, 8, 4], strides = [1, 1, 1]} : vector<9x8x4xf32> to vector<1x8x4xf32>
    %7 = vector.shape_cast %6 : vector<1x8x4xf32> to vector<8x4xf32>
    %cst_7 = arith.constant dense<0.000000e+00> : vector<8x128xf32>
    %8 = tpu.matmul %7, %5, %cst_7 {dimension_numbers = #tpu.dot_dimension_numbers<[1], [0], [0], [1], [0, 0, 1, 1], [], []>} : vector<8x4xf32>, vector<4x128xf32>, vector<8x128xf32> -> vector<8x128xf32>
    %9 = arith.addf %3, %8 : vector<8x128xf32>
    %10 = vector.extract_strided_slice %1 {offsets = [0, 0, 1], sizes = [4, 8, 16], strides = [1, 1, 1]} : vector<4x10x18xf32> to vector<4x8x16xf32>
    %11 = vector.shape_cast %10 : vector<4x8x16xf32> to vector<4x128xf32>
    %12 = vector.extract_strided_slice %2 {offsets = [1, 0, 0], sizes = [1, 8, 4], strides = [1, 1, 1]} : vector<9x8x4xf32> to vector<1x8x4xf32>
    %13 = vector.shape_cast %12 : vector<1x8x4xf32> to vector<8x4xf32>
    %cst_8 = arith.constant dense<0.000000e+00> : vector<8x128xf32>
    %14 = tpu.matmul %13, %11, %cst_8 {dimension_numbers = #tpu.dot_dimension_numbers<[1], [0], [0], [1], [0, 0, 1, 1], [], []>} : vector<8x4xf32>, vector<4x128xf32>, vector<8x128xf32> -> vector<8x128xf32>
    %15 = arith.addf %9, %14 : vector<8x128xf32>
    %16 = vector.extract_strided_slice %1 {offsets = [0, 0, 2], sizes = [4, 8, 16], strides = [1, 1, 1]} : vector<4x10x18xf32> to vector<4x8x16xf32>
    %17 = vector.shape_cast %16 : vector<4x8x16xf32> to vector<4x128xf32>
    %18 = vector.extract_strided_slice %2 {offsets = [2, 0, 0], sizes = [1, 8, 4], strides = [1, 1, 1]} : vector<9x8x4xf32> to vector<1x8x4xf32>
    %19 = vector.shape_cast %18 : vector<1x8x4xf32> to vector<8x4xf32>
    %cst_9 = arith.constant dense<0.000000e+00> : vector<8x128xf32>
    %20 = tpu.matmul %19, %17, %cst_9 {dimension_numbers = #tpu.dot_dimension_numbers<[1], [0], [0], [1], [0, 0, 1, 1], [], []>} : vector<8x4xf32>, vector<4x128xf32>, vector<8x128xf32> -> vector<8x128xf32>
    %21 = arith.addf %15, %20 : vector<8x128xf32>
    %22 = vector.extract_strided_slice %1 {offsets = [0, 1, 0], sizes = [4, 8, 16], strides = [1, 1, 1]} : vector<4x10x18xf32> to vector<4x8x16xf32>
    %23 = vector.shape_cast %22 : vector<4x8x16xf32> to vector<4x128xf32>
    %24 = vector.extract_strided_slice %2 {offsets = [3, 0, 0], sizes = [1, 8, 4], strides = [1, 1, 1]} : vector<9x8x4xf32> to vector<1x8x4xf32>
    %25 = vector.shape_cast %24 : vector<1x8x4xf32> to vector<8x4xf32>
    %cst_10 = arith.constant dense<0.000000e+00> : vector<8x128xf32>
    %26 = tpu.matmul %25, %23, %cst_10 {dimension_numbers = #tpu.dot_dimension_numbers<[1], [0], [0], [1], [0, 0, 1, 1], [], []>} : vector<8x4xf32>, vector<4x128xf32>, vector<8x128xf32> -> vector<8x128xf32>
    %27 = arith.addf %21, %26 : vector<8x128xf32>
    %28 = vector.extract_strided_slice %1 {offsets = [0, 1, 1], sizes = [4, 8, 16], strides = [1, 1, 1]} : vector<4x10x18xf32> to vector<4x8x16xf32>
    %29 = vector.shape_cast %28 : vector<4x8x16xf32> to vector<4x128xf32>
    %30 = vector.extract_strided_slice %2 {offsets = [4, 0, 0], sizes = [1, 8, 4], strides = [1, 1, 1]} : vector<9x8x4xf32> to vector<1x8x4xf32>
    %31 = vector.shape_cast %30 : vector<1x8x4xf32> to vector<8x4xf32>
    %cst_11 = arith.constant dense<0.000000e+00> : vector<8x128xf32>
    %32 = tpu.matmul %31, %29, %cst_11 {dimension_numbers = #tpu.dot_dimension_numbers<[1], [0], [0], [1], [0, 0, 1, 1], [], []>} : vector<8x4xf32>, vector<4x128xf32>, vector<8x128xf32> -> vector<8x128xf32>
    %33 = arith.addf %27, %32 : vector<8x128xf32>
    %34 = vector.extract_strided_slice %1 {offsets = [0, 1, 2], sizes = [4, 8, 16], strides = [1, 1, 1]} : vector<4x10x18xf32> to vector<4x8x16xf32>
    %35 = vector.shape_cast %34 : vector<4x8x16xf32> to vector<4x128xf32>
    %36 = vector.extract_strided_slice %2 {offsets = [5, 0, 0], sizes = [1, 8, 4], strides = [1, 1, 1]} : vector<9x8x4xf32> to vector<1x8x4xf32>
    %37 = vector.shape_cast %36 : vector<1x8x4xf32> to vector<8x4xf32>
    %cst_12 = arith.constant dense<0.000000e+00> : vector<8x128xf32>
    %38 = tpu.matmul %37, %35, %cst_12 {dimension_numbers = #tpu.dot_dimension_numbers<[1], [0], [0], [1], [0, 0, 1, 1], [], []>} : vector<8x4xf32>, vector<4x128xf32>, vector<8x128xf32> -> vector<8x128xf32>
    %39 = arith.addf %33, %38 : vector<8x128xf32>
    %40 = vector.extract_strided_slice %1 {offsets = [0, 2, 0], sizes = [4, 8, 16], strides = [1, 1, 1]} : vector<4x10x18xf32> to vector<4x8x16xf32>
    %41 = vector.shape_cast %40 : vector<4x8x16xf32> to vector<4x128xf32>
    %42 = vector.extract_strided_slice %2 {offsets = [6, 0, 0], sizes = [1, 8, 4], strides = [1, 1, 1]} : vector<9x8x4xf32> to vector<1x8x4xf32>
    %43 = vector.shape_cast %42 : vector<1x8x4xf32> to vector<8x4xf32>
    %cst_13 = arith.constant dense<0.000000e+00> : vector<8x128xf32>
    %44 = tpu.matmul %43, %41, %cst_13 {dimension_numbers = #tpu.dot_dimension_numbers<[1], [0], [0], [1], [0, 0, 1, 1], [], []>} : vector<8x4xf32>, vector<4x128xf32>, vector<8x128xf32> -> vector<8x128xf32>
    %45 = arith.addf %39, %44 : vector<8x128xf32>
    %46 = vector.extract_strided_slice %1 {offsets = [0, 2, 1], sizes = [4, 8, 16], strides = [1, 1, 1]} : vector<4x10x18xf32> to vector<4x8x16xf32>
    %47 = vector.shape_cast %46 : vector<4x8x16xf32> to vector<4x128xf32>
    %48 = vector.extract_strided_slice %2 {offsets = [7, 0, 0], sizes = [1, 8, 4], strides = [1, 1, 1]} : vector<9x8x4xf32> to vector<1x8x4xf32>
    %49 = vector.shape_cast %48 : vector<1x8x4xf32> to vector<8x4xf32>
    %cst_14 = arith.constant dense<0.000000e+00> : vector<8x128xf32>
    %50 = tpu.matmul %49, %47, %cst_14 {dimension_numbers = #tpu.dot_dimension_numbers<[1], [0], [0], [1], [0, 0, 1, 1], [], []>} : vector<8x4xf32>, vector<4x128xf32>, vector<8x128xf32> -> vector<8x128xf32>
    %51 = arith.addf %45, %50 : vector<8x128xf32>
    %52 = vector.extract_strided_slice %1 {offsets = [0, 2, 2], sizes = [4, 8, 16], strides = [1, 1, 1]} : vector<4x10x18xf32> to vector<4x8x16xf32>
    %53 = vector.shape_cast %52 : vector<4x8x16xf32> to vector<4x128xf32>
    %54 = vector.extract_strided_slice %2 {offsets = [8, 0, 0], sizes = [1, 8, 4], strides = [1, 1, 1]} : vector<9x8x4xf32> to vector<1x8x4xf32>
    %55 = vector.shape_cast %54 : vector<1x8x4xf32> to vector<8x4xf32>
    %cst_15 = arith.constant dense<0.000000e+00> : vector<8x128xf32>
    %56 = tpu.matmul %55, %53, %cst_15 {dimension_numbers = #tpu.dot_dimension_numbers<[1], [0], [0], [1], [0, 0, 1, 1], [], []>} : vector<8x4xf32>, vector<4x128xf32>, vector<8x128xf32> -> vector<8x128xf32>
    %57 = arith.addf %51, %56 : vector<8x128xf32>
    %c0_16 = arith.constant 0 : index
    %c0_17 = arith.constant 0 : index
    %58 = vector.load %arg4[%c0_16, %c0_17] : memref<8x1xf32, #tpu.memory_space<vmem>>, vector<8x1xf32>
    %59 = vector.broadcast %58 : vector<8x1xf32> to vector<8x128xf32>
    %60 = arith.addf %57, %59 : vector<8x128xf32>
    %c0_18 = arith.constant 0 : index
    %c0_19 = arith.constant 0 : index
    %c0_20 = arith.constant 0 : index
    %61 = vector.load %arg5[%c0_18, %c0_19, %c0_20] : memref<1x8x128xf32, #tpu.memory_space<vmem>>, vector<1x8x128xf32>
    %62 = vector.shape_cast %61 : vector<1x8x128xf32> to vector<8x128xf32>
    %63 = vector.shape_cast %60 : vector<8x128xf32> to vector<1x8x128xf32>
    tpu.vector_store %arg5[%c0_18, %c0_19, %c0_20], %63 {strides = array<i32>} : memref<1x8x128xf32, #tpu.memory_space<vmem>>, vector<1x8x128xf32>,
    return
  }
  func.func @transform_0(%arg0: i32, %arg1: i32) -> (i32, i32, i32, i32, i32) {
    %c0_i32 = arith.constant 0 : i32
    %c0_i32_0 = arith.constant 0 : i32
    %c0_i32_1 = arith.constant 0 : i32
    %c0_i32_2 = arith.constant 0 : i32
    return %arg0, %c0_i32, %arg1, %c0_i32_0, %c0_i32_1 : i32, i32, i32, i32, i32
  }
  func.func @transform_1(%arg0: i32, %arg1: i32) -> (i32, i32, i32) {
    %c0_i32 = arith.constant 0 : i32
    %c0_i32_0 = arith.constant 0 : i32
    %c0_i32_1 = arith.constant 0 : i32
    %c0_i32_2 = arith.constant 0 : i32
    return %c0_i32, %c0_i32_0, %c0_i32_1 : i32, i32, i32
  }
  func.func @transform_2(%arg0: i32, %arg1: i32) -> (i32, i32) {
    %c0_i32 = arith.constant 0 : i32
    %c0_i32_0 = arith.constant 0 : i32
    %c0_i32_1 = arith.constant 0 : i32
    return %c0_i32, %c0_i32_0 : i32, i32
  }
  func.func @transform_3(%arg0: i32, %arg1: i32) -> (i32, i32, i32) {
    %c0_i32 = arith.constant 0 : i32
    %c0_i32_0 = arith.constant 0 : i32
    return %arg0, %c0_i32, %arg1 : i32, i32, i32
  }
}

</mosaic_0001>

<bundles_post_ra>
// kernel: conv_layer_forward.1
= control target key start
LH: loop header
LB: loop body
LE: loop exit
PB: predicated region body
PF: predicated region fallthrough
CT: control target
= control target key end

     0   :  { %s1746_s12 = smov 0   ;;  %s1748_s13 = smov 0   ;;  %s2457_s0 = inlined_call_operand.vmem [shape: f32[2,4,2,10,18], index: 0, kind: input, shape index: {}]   ;;  %s2458_s1 = inlined_call_operand.vmem [shape: f32[9,8,4], index: 1, kind: input, shape index: {}]   ;;  %s2459_s2 = inlined_call_operand.vmem [shape: f32[8,1], index: 2, kind: input, shape index: {}]   ;;  %s2460_s3 = inlined_call_operand.vmem [shape: f32[2,8,256], index: 3, kind: output, shape index: {}]  }
   0x1   :  { %s1750_s14 = smov 0   ;;  %s1752_s15 = smov 0  }
   0x2   :  { %s1754_s16 = smov 0   ;;  %s1756_s17 = smov 0  }
   0x3   :  { %s1758_s18 = smov 0  }
   0x4 LB: > { %s22_s19 = sadd.s32 1, %s1704_s16  ;;  %s25_s20 = sadd.s32 1, %s1708_s17  ;;  %s1712_s18 = sphi %s1758_s18, %s13_s18   ;;  %s1708_s17 = sphi %s1756_s17, %s2466_s17   ;;  %s1704_s16 = sphi %s1754_s16, %s2465_s16   ;;  %s1700_s15 = sphi %s1752_s15, %s2464_s15   ;;  %s1696_s14 = sphi %s1750_s14, %s2463_s14   ;;  %s1692_s13 = sphi %s1748_s13, %s2462_s13   ;;  %s1688_s12 = sphi %s1746_s12, %s2461_s12  }
   0x5   : > { %p23_p0 = scmp.ge.s32.totalorder %s22_s19, 2  ;;  %p41_p1 = scmp.ne.s32.totalorder %s1692_s13, %s1688_s12 }
   0x6   : > { %p42_p2 = scmp.eq.s32.totalorder %s1712_s18, 0  ;;  %s34_s24 = sadd.s32 1, %s1692_s13 }
   0x7   : > { %s2468_s19 = smov (%p23_p0, %s22_s19), 0  ;;  %s2470_s20 = smov (!%p23_p0, %s25_s20), %s1708_s17 }
   0x8   : > { %p43_p3 = por %p42_p2, %p41_p1  ;;  %p27_p4 = scmp.ge.s32.totalorder %s2470_s20, 2 }
   0x9   : > { %s30_s21 = ssub.s32 %s1704_s16, %s2468_s19  ;;  %p1560_p6 = scmp.ge.s32.totalorder %s1712_s18, 4 }
   0xa   : > { %s2472_s20 = smov (%p27_p4, %s2470_s20), 0 }
   0xb   : > { %s29_s22 = ssub.s32 %s1708_s17, %s2472_s20  ;;  %143 = sbr.rel (%p1560_p6) target bundleno = 31 (0x1f), region = 24 }
   0xc   : > { %s31_s23 = sor.u32 %s30_s21, %s29_s22 }
   0xd   : > { %p32_p5 = scmp.eq.s32.totalorder %s31_s23, 0 }
   0xf   : > { %s1797_s25 = scalar_select %p32_p5, %s1692_s13, %s34_s24  }
  0x10   : > { %146 = sbr.rel (!%p43_p3) target bundleno = 31 (0x1f), region = 28  ;;  %s148_s26 = sand.u32 (%p43_p3), 1, %s1692_s13  }
  0x11   : > { %s1562_s27 = sshll.u32 (%p43_p3), %s1704_s16, 1  ;;  %s1561_s28 = sshll.u32 (%p43_p3), %s148_s26, 6 }
  0x12   : > { %s1563_s29 = sshll.u32 (%p43_p3), %s1708_s17, 4  ;;  %s150_s8 = scalar_lea.vmem (%p43_p3), [#allocation2], %s1561_s28 }
  0x13   : > { %s153_s30 = sadd.s32 (%p43_p3), %s1563_s29, %s1562_s27 }
  0x14   : > { %s1564_s4 = sshll.u32 (%p43_p3), %s153_s30, 3 }
  0x15   : > { %s155_s7 = scalar_lea.vmem %s2457_s0, %s1564_s4 }
  0x16   : > { %v198_v0 = vld [vmem:[%s155_s7] sm:$0xff]  ;;  %v200_v1 = vld [vmem:[%s155_s7 + $0x8] sm:$0xff] }
  0x17   : > { %v202_v2 = vld [vmem:[%s155_s7 + $0x20] sm:$0xff]  ;;  %199 = vst [vmem:[%s150_s8] sm:$0xff] %v198_v0  ;;  %v204_v3 = vld [vmem:[%s155_s7 + $0x28] sm:$0xff] }
  0x18   : > { %201 = vst [vmem:[%s150_s8 + $0x8] sm:$0xff] %v200_v1  ;;  %v206_v4 = vld [vmem:[%s155_s7 + $0x40] sm:$0xff]  ;;  %v208_v5 = vld [vmem:[%s155_s7 + $0x48] sm:$0xff] }
  0x19   : > { %203 = vst [vmem:[%s150_s8 + $0x10] sm:$0xff] %v202_v2  ;;  %v210_v6 = vld [vmem:[%s155_s7 + $0x60] sm:$0xff]  ;;  %v212_v7 = vld [vmem:[%s155_s7 + $0x68] sm:$0xff] }
  0x1a   : > { %205 = vst [vmem:[%s150_s8 + $0x18] sm:$0xff] %v204_v3 }
  0x1b   : > { %207 = vst [vmem:[%s150_s8 + $0x20] sm:$0xff] %v206_v4 }
  0x1c   : > { %209 = vst [vmem:[%s150_s8 + $0x28] sm:$0xff] %v208_v5 }
  0x1d   : > { %211 = vst [vmem:[%s150_s8 + $0x30] sm:$0xff] %v210_v6 }
  0x1e   : > { %213 = vst [vmem:[%s150_s8 + $0x38] sm:$0xff] %v212_v7 }
  0x1f PF: > { %p1565_p7 = scmp.ge.s32.totalorder %s1712_s18, 1  ;;  %p218_p8 = scmp.lt.s32.totalorder %s1712_s18, 5 }
  0x21   : > { %p219_p9 = pnand %p1565_p7, %p218_p8 }
  0x22   : > { %s225_s9 = sand.u32 (!%p219_p9), 1, %s1688_s12   ;;  %s1716_s12 = smov (!%p219_p9), 64  }
  0x23   : > { %222 = sbr.rel (%p219_p9) target bundleno = 595 (0x253), region = 66  ;;  %s1566_s10 = sshll.u32 (!%p219_p9), %s225_s9, 6 }
  0x24   : > { %s1809_s11 = scalar_lea.vmem (!%p219_p9), [#allocation2], %s1566_s10  ;;  %s1717_s21 = smov (!%p219_p9), 32  }
  0x25   : > { %s1718_s22 = smov (!%p219_p9), 96   ;;  %s1719_s23 = smov (!%p219_p9), 126  }
  0x26   : > { %s1720_s24 = smov (!%p219_p9), 16   ;;  %s1721_s26 = smov (!%p219_p9), 127  }
  0x27   : > { %s1722_s27 = smov (!%p219_p9), 48   ;;  %s1723_s28 = smov (!%p219_p9), 112  }
  0x28   : > { %v1714_v8 = vmov 1983009808   ;;  %v1812_v10 = vld [vmem:[%s1809_s11] sm:$0xff]  ;;  %v1815_v11 = vld [vmem:[%s1809_s11 + $0x10] sm:$0xff]  ;;  %vm277_vm0 = vcmask 1047556   ;;  %s1724_s29 = smov 80  }
  0x29   : > { %v282_v9 = vunpack.c.l.s4 %v1714_v8  ;;  %v1818_v12 = vld [vmem:[%s1809_s11 + $0x20] sm:$0xff]  ;;  %v1823_v14 = vld [vmem:[%s1809_s11 + $0x30] sm:$0xff]  ;;  %v279_v15 = vrot.slane %v1812_v10, 4  ;;  %v291_v16 = vrot.slane %v1815_v11, 4  ;;  %v1715_v17 = vmov 1934713408  }
  0x2a   : > { %v306_v18 = vunpack.c.l.s4 %v1715_v17  ;;  %v276_v19 = vrot.slane %v1818_v12, 4  ;;  %v289_v20 = vrot.slane %v1823_v14, 4  ;;  %v264_v50 = vld [vmem:[%s1809_s11 + $0x28] sm:$0x3]  ;;  %v1072_v52 = vrot.slane %v1818_v12, 2  ;;  %p251_p10 = scmp.lt.s32.totalorder %s1700_s15, 1 }
  0x2b   : > { %v1820_v13 = vunpack.c.0.s8 %v282_v9  ;;  %v280_v21 = vsel %vm277_vm0, %v1818_v12, %v279_v15  ;;  %v292_v22 = vsel %vm277_vm0, %v1823_v14, %v291_v16  ;;  %v260_v51 = vld [vmem:[%s1809_s11 + $0x8] sm:$0x3]  ;;  %v1073_v53 = vrot.slane %v264_v50, 2  ;;  %v266_v62 = vld [vmem:[%s1809_s11 + $0x38] sm:$0x3]  ;;  %p253_p11 = scmp.lt.s32.totalorder %s1696_s14, 1 }
  0x2c   : > { %v278_v23 = vsel %vm277_vm0, %v276_v19, %v1812_v10  ;;  %v290_v27 = vsel %vm277_vm0, %v289_v20, %v1815_v11  ;;  %v1840_v28 = vunpack.c.0.s8 %v306_v18  ;;  %v1066_v54 = vrot.slane %v1812_v10, 2  ;;  %v262_v63 = vld [vmem:[%s1809_s11 + $0x18] sm:$0x3]  ;;  %s2474_s15 = smov (!%p251_p10, %s1700_s15), 1 }
  0x2d   : > { %v288_v24 = vperm.slane %v280_v21, %v1820_v13  ;;  %v300_v25 = vperm.slane %v292_v22, %v1820_v13  ;;  %v284_v26 = vperm.slane %v278_v23, %v1820_v13  ;;  %v296_v29 = vperm.slane %v290_v27, %v1820_v13  ;;  %s2476_s14 = smov (!%p253_p11, %s1696_s14), 1  ;;  %s1567_s5 = sshll.u32 %s2474_s15, 1 }
  0x2e   : > { %v1067_v55 = vrot.slane %v260_v51, 2  ;;  %vm1065_vm1 = vcmask 1045504   ;;  %v1075_v0 = vrot.slane %v1823_v14, 2  ;;  %v1076_v1 = vrot.slane %v266_v62, 2  ;;  %s256_s6 = sadd.s32 %s1567_s5, %s2476_s14 }
  0x2f   : > { %v313_v30 = vrot.slane %v300_v25, 4  ;;  %v303_v31 = vrot.slane %v284_v26, 4  ;;  %v315_v32 = vrot.slane %v288_v24, 4  ;;  %v301_v33 = vrot.slane %v296_v29, 4  ;;  %s1568_s7 = sshll.u32 %s256_s6, 3 }
  0x30   : > { %v1074_v56 = vsel %vm1065_vm1, %v1072_v52, %v1073_v53  ;;  %v1068_v57 = vsel %vm1065_vm1, %v1066_v54, %v1067_v55  ;;  %v680_v2 = vrot.slane %v1823_v14, 1  ;;  %v681_v3 = vrot.slane %v266_v62, 1  ;;  %s258_s10 = scalar_lea.vmem %s2460_s3, %s1568_s7 }
  0x31   : > { %v314_v34 = vsel %vm277_vm0, %v313_v30, %v288_v24  ;;  %v304_v35 = vsel %vm277_vm0, %v296_v29, %v303_v31  ;;  %v316_v36 = vsel %vm277_vm0, %v300_v25, %v315_v32  ;;  %v302_v40 = vsel %vm277_vm0, %v301_v33, %v284_v26 }
  0x32   : > { %v320_v37 = vperm.slane %v314_v34, %v1840_v28  ;;  %v312_v38 = vperm.slane %v304_v35, %v1840_v28  ;;  %v324_v39 = vperm.slane %v316_v36, %v1840_v28  ;;  %v1851_v41 = vperm.slane %v302_v40, %v1840_v28 }
  0x33   : > { %v1082_v58 = vrot.slane %v1074_v56, 4  ;;  %v1084_v59 = vrot.slane %v1068_v57, 4  ;;  %vm670_vm2 = vcmask 1046528   ;;  %v674_v4 = vrot.slane %v1815_v11, 1 }
  0x34   : > { %346 = vrot.lane.b32.xlu1 %v320_v37, %s1716_s12  ;;  %338 = vrot.lane.b32.xlu0 %v312_v38, %s1717_s21  ;;  %v325_v42 = vrot.slane %v1851_v41, 4  ;;  %v327_v44 = vrot.slane %v312_v38, 4  ;;  %v331_v45 = vrot.slane %v324_v39, 4  ;;  %v329_v46 = vrot.slane %v320_v37, 4 }
  0x35   : > { %354 = vrot.lane.b32.xlu2 %v324_v39, %s1718_s22  ;;  %v1882_v60 = vsel %vm277_vm0, %v1082_v58, %v1068_v57  ;;  %v1885_v61 = vsel %vm277_vm0, %v1074_v56, %v1084_v59  ;;  %v675_v5 = vrot.slane %v262_v63, 1  ;;  %v1899_v6 = vsel %vm1065_vm1, %v1075_v0, %v1076_v1 }
  0x36   : > { %v326_v43 = vsel %vm277_vm0, 0.0, %v325_v42  ;;  %v328_v47 = vsel %vm277_vm0, 0.0, %v327_v44  ;;  %v332_v48 = vsel %vm277_vm0, 0.0, %v331_v45  ;;  %v330_v49 = vsel %vm277_vm0, 0.0, %v329_v46 }
  0x37   : > { %v682_v7 = vsel %vm670_vm2, %v680_v2, %v681_v3  ;;  %v676_v8 = vsel %vm670_vm2, %v674_v4, %v675_v5  ;;  %v677_v9 = vrot.slane %v1818_v12, 1  ;;  %v1069_v15 = vrot.slane %v1815_v11, 2 }
  0x38   : > { %v1070_v16 = vrot.slane %v262_v63, 2  ;;  %v671_v19 = vrot.slane %v1812_v10, 1  ;;  %v672_v20 = vrot.slane %v260_v51, 1  ;;  %v701_v35 = vrot.slane %v676_v8, 4 }
  0x39   : > { %vm361_vm3 = vcmask 130048   ;;  %vm363_vm4 = vcmask 261120   ;;  %vm365_vm5 = vcmask 392192   ;;  %vm367_vm6 = vcmask 523264  }
  0x3a   : > { %v1911_v18 = vsel %vm1065_vm1, %v1069_v15, %v1070_v16  ;;  %v702_v38 = vsel %vm277_vm0, %v682_v7, %v701_v35  ;;  %vm369_vm7 = vcmask 654336   ;;  %vm371_vm8 = vcmask 785408  }
  0x3b   : > { %v710_v42 = vperm.slane %v702_v38, %v1820_v13  ;;  %vm373_vm9 = vcmask 916480   ;;  %vm486_vm10 = vcmask 1043456   ;;  %vm482_vm11 = vcmask 31744  }
  0x3c   : > { %542 = vrot.lane.b32.xlu1 %v1823_v14, %s1719_s23  ;;  %334 = vrot.lane.b32.xlu0 %v326_v43, %s1720_s24 }
  0x3d   : > { %385 = vrot.lane.b32.xlu2 %v1823_v14, %s1721_s26  ;;  %v678_v14 = vrot.slane %v264_v50, 1  ;;  %v723_v45 = vrot.slane %v710_v42, 4 }
  0x3f   : > { %v679_v17 = vsel %vm670_vm2, %v677_v9, %v678_v14  ;;  %v1094_v14 = vrot.slane %v1899_v6, 4 }
  0x44   : > { %342 = vrot.lane.b32.xlu1 %v328_v47, %s1722_s27  ;;  %358 = vrot.lane.b32.xlu0 %v332_v48, %s1723_s28 }
  0x45   : > { %350 = vrot.lane.b32.xlu2 %v330_v49, %s1724_s29 }
  0x4c   : > { %540 = vrot.lane.b32.xlu1 %v1818_v12, %s1719_s23  ;;  %538 = vrot.lane.b32.xlu0 %v1815_v11, %s1719_s23 }
  0x4d   : > { %381 = vrot.lane.b32.xlu2 %v1815_v11, %s1721_s26  ;;  %v699_v11 = vrot.slane %v682_v7, 4 }
  0x4f   : > { %v700_v21 = vsel %vm277_vm0, %v699_v11, %v676_v8 }
  0x50   : > { %v706_v22 = vperm.slane %v700_v21, %v1820_v13 }
  0x52   : > { %v711_v25 = vrot.slane %v706_v22, 4 }
  0x54   : > { %536 = vrot.lane.b32.xlu1 %v1812_v10, %s1719_s23  ;;  %383 = vrot.lane.b32.xlu0 %v1818_v12, %s1721_s26  ;;  %v673_v12 = vsel %vm670_vm2, %v671_v19, %v672_v20  ;;  %v1095_v19 = vsel %vm277_vm0, %v1094_v14, %v1911_v18  ;;  %v1096_v14 = vrot.slane %v1911_v18, 4 }
  0x55   : > { %379 = vrot.lane.b32.xlu2 %v1812_v10, %s1721_s26  ;;  %v687_v10 = vrot.slane %v679_v17, 4  ;;  %v689_v37 = vrot.slane %v673_v12, 4 }
  0x57   : > { %v688_v23 = vsel %vm277_vm0, %v687_v10, %v673_v12  ;;  %v690_v43 = vsel %vm277_vm0, %v679_v17, %v689_v37 }
  0x58   : > { %v694_v24 = vperm.slane %v688_v23, %v1820_v13  ;;  %v698_v44 = vperm.slane %v690_v43, %v1820_v13 }
  0x5a   : > { %v712_v26 = vsel %vm277_vm0, %v711_v25, %v694_v24  ;;  %v713_v31 = vrot.slane %v694_v24, 4  ;;  %v724_v46 = vsel %vm277_vm0, %v723_v45, %v698_v44  ;;  %v725_v49 = vrot.slane %v698_v44, 4 }
  0x5b   : > { %v1936_v27 = vperm.slane %v712_v26, %v1840_v28  ;;  %v730_v47 = vperm.slane %v724_v46, %v1840_v28  ;;  %v1101_v24 = vperm.slane %v1095_v19, %v1820_v13 }
  0x5c   : > { %1206 = vrot.lane.b32.xlu1 %v1899_v6, %s1721_s26  ;;  %811 = vrot.lane.b32.xlu0 %v682_v7, %s1721_s26  ;;  %v714_v32 = vsel %vm277_vm0, %v706_v22, %v713_v31  ;;  %v726_v51 = vsel %vm277_vm0, %v710_v42, %v725_v49 }
  0x5d   : > { %807 = vrot.lane.b32.xlu2 %v676_v8, %s1721_s26  ;;  %v735_v29 = vrot.slane %v1936_v27, 4  ;;  %v722_v33 = vperm.slane %v714_v32, %v1840_v28  ;;  %v739_v50 = vrot.slane %v730_v47, 4  ;;  %v1958_v52 = vperm.slane %v726_v51, %v1840_v28 }
  0x5f   : > { %v736_v30 = vsel %vm277_vm0, 0.0, %v735_v29  ;;  %v737_v36 = vrot.slane %v722_v33, 4  ;;  %v740_v55 = vsel %vm277_vm0, 0.0, %v739_v50 }
  0x61   : > { %v738_v39 = vsel %vm277_vm0, 0.0, %v737_v36 }
  0x64   : > { %941 = vrot.lane.b32.xlu1 %v682_v7, %s1719_s23  ;;  %809 = vrot.lane.b32.xlu0 %v679_v17, %s1721_s26 }
  0x65   : > { %1202 = vrot.lane.b32.xlu2 %v1911_v18, %s1721_s26 }
  0x6c   : > { %805 = vrot.lane.b32.xlu1 %v673_v12, %s1721_s26  ;;  %1204 = vrot.lane.b32.xlu0 %v1074_v56, %s1721_s26 }
  0x6d   : > { %937 = vrot.lane.b32.xlu2 %v676_v8, %s1719_s23 }
  0x74   : > { %1200 = vrot.lane.b32.xlu1 %v1068_v57, %s1721_s26  ;;  %939 = vrot.lane.b32.xlu0 %v679_v17, %s1719_s23 }
  0x75   : > { %935 = vrot.lane.b32.xlu2 %v673_v12, %s1719_s23  ;;  %v1982_v12 = vperm.slane %v1882_v60, %v1820_v13 }
  0x77   : > { %v1108_v37 = vrot.slane %v1982_v12, 4 }
  0x7c   : > { %1336 = vrot.lane.b32.xlu0 %v1899_v6, %s1719_s23  ;;  %1332 = vrot.lane.b32.xlu1 %v1911_v18, %s1719_s23 }
  0x7d   : > { %1334 = vrot.lane.b32.xlu2 %v1074_v56, %s1719_s23 }
  0x84   : > { %1330 = vrot.lane.b32.xlu0 %v1068_v57, %s1719_s23  ;;  %764 = vrot.lane.b32.xlu1 %v1958_v52, %s1718_s22 }
  0x85   : > { %744 = vrot.lane.b32.xlu2 %v736_v30, %s1720_s24 }
  0x8d   : > { %748 = vrot.lane.b32.xlu2 %v722_v33, %s1717_s21 }
  0x8f   : > { %v355_v34 = vpop.permute.xlu2 %354 }
  0x95   : > { %752 = vrot.lane.b32.xlu2 %v738_v39, %s1722_s27 }
  0x97   : > { %v1947_v40 = vpop.permute.xlu2 %385 }
  0x98   : > { %v403_v16 = vrot.slane %v1947_v40, 4 }
  0x9d   : > { %756 = vrot.lane.b32.xlu2 %v730_v47, %s1716_s12 }
  0x9f   : > { %v351_v48 = vpop.permute.xlu2 %350 }
  0xa5   : > { %760 = vrot.lane.b32.xlu2 %v740_v55, %s1724_s29 }
  0xa6   : > { %v347_v53 = vpop.permute.xlu1 %346  ;;  %v339_v54 = vpop.permute.xlu0 %338 }
  0xa7   : > { %v382_v56 = vpop.permute.xlu2 %381 }
  0xa8   : > { %v405_v10 = vrot.slane %v382_v56, 4  ;;  %v404_v25 = vsel %vm277_vm0, %v403_v16, %v382_v56 }
  0xa9   : > { %v410_v49 = vperm.slane %v404_v25, %v1820_v13 }
  0xae   : > { %v543_v57 = vpop.permute.xlu1 %542  ;;  %v335_v58 = vpop.permute.xlu0 %334 }
  0xaf   : > { %v380_v59 = vpop.permute.xlu2 %379  ;;  %v362_v62 = vsel %vm361_vm3, %v1851_v41, %v335_v58  ;;  %v560_v11 = vrot.slane %v543_v57, 4 }
  0xb0   : > { %v364_v0 = vsel %vm363_vm4, %v362_v62, %v339_v54  ;;  %v393_v20 = vrot.slane %v380_v59, 4 }
  0xb6   : > { %v343_v63 = vpop.permute.xlu1 %342  ;;  %v359_v1 = vpop.permute.xlu0 %358 }
  0xb7   : > { %v366_v2 = vsel %vm365_vm5, %v364_v0, %v343_v63  ;;  %v1971_v41 = vpop.permute.xlu2 %807 }
  0xb8   : > { %v368_v3 = vsel %vm367_vm6, %v366_v2, %v347_v53 }
  0xb9   : > { %v370_v4 = vsel %vm369_vm7, %v368_v3, %v351_v48  ;;  %v1109_v48 = vsel %vm277_vm0, %v1101_v24, %v1108_v37 }
  0xba   : > { %v372_v5 = vsel %vm371_vm8, %v370_v4, %v355_v34  ;;  %v406_v34 = vsel %vm277_vm0, %v1947_v40, %v405_v10  ;;  %v1097_v10 = vsel %vm277_vm0, %v1899_v6, %v1096_v14 }
  0xbb   : > { %v374_v7 = vsel %vm373_vm9, %v372_v5, %v359_v1  ;;  %v414_v40 = vperm.slane %v406_v34, %v1820_v13 }
  0xbc   : > { %1571 = vmatpush.msk.msra.mxu1 %vm486_vm10, %v374_v7 }
  0xbd   : > { %v427_v3 = vrot.slane %v414_v40, 4 }
  0xbe   : > { %v541_v8 = vpop.permute.xlu1 %540  ;;  %v539_v9 = vpop.permute.xlu0 %538 }
  0xbf   : > { %v562_v15 = vrot.slane %v539_v9, 4  ;;  %v1984_v21 = vpop.permute.xlu2 %1202  ;;  %v548_v22 = vrot.slane %v541_v8, 4  ;;  %v561_v26 = vsel %vm277_vm0, %v560_v11, %v539_v9 }
  0xc0   : > { %v567_v38 = vperm.slane %v561_v26, %v1820_v13  ;;  %v2060_v26 = vperm.slane %v1109_v48, %v1840_v28 }
  0xc1   : > { %v563_v17 = vsel %vm277_vm0, %v543_v57, %v562_v15  ;;  %v1106_v15 = vrot.slane %v1101_v24, 4  ;;  %v415_v24 = vrot.slane %v410_v49, 4 }
  0xc2   : > { %v571_v23 = vperm.slane %v563_v17, %v1820_v13  ;;  %v572_v2 = vrot.slane %v567_v38, 4 }
  0xc4   : > { %v584_v39 = vrot.slane %v571_v23, 4 }
  0xc6   : > { %v537_v29 = vpop.permute.xlu1 %536  ;;  %v384_v30 = vpop.permute.xlu0 %383 }
  0xc7   : > { %v549_v31 = vsel %vm277_vm0, %v548_v22, %v537_v29  ;;  %v550_v32 = vrot.slane %v537_v29, 4  ;;  %v391_v60 = vrot.slane %v384_v30, 4  ;;  %v394_v33 = vsel %vm277_vm0, %v384_v30, %v393_v20  ;;  %v2007_v54 = vpop.permute.xlu2 %937 }
  0xc8   : > { %v555_v35 = vperm.slane %v549_v31, %v1820_v13  ;;  %v402_v36 = vperm.slane %v394_v33, %v1820_v13  ;;  %v1107_v22 = vsel %vm277_vm0, %v1106_v15, %v1982_v12  ;;  %v2063_v29 = vperm.slane %v1097_v10, %v1820_v13 }
  0xc9   : > { %v551_v42 = vsel %vm277_vm0, %v541_v8, %v550_v32  ;;  %v392_v43 = vsel %vm277_vm0, %v391_v60, %v380_v59  ;;  %v2078_v60 = vperm.slane %v1885_v61, %v1820_v13  ;;  %v831_v10 = vrot.slane %v1971_v41, 4 }
  0xca   : > { %v559_v44 = vperm.slane %v551_v42, %v1820_v13  ;;  %v574_v45 = vrot.slane %v555_v35, 4  ;;  %v398_v46 = vperm.slane %v392_v43, %v1820_v13  ;;  %v429_v47 = vrot.slane %v402_v36, 4 }
  0xcb   : > { %v573_v7 = vsel %vm277_vm0, %v572_v2, %v555_v35  ;;  %v428_v8 = vsel %vm277_vm0, %v427_v3, %v402_v36  ;;  %v1118_v35 = vrot.slane %v2063_v29, 4 }
  0xcc   : > { %v417_v50 = vrot.slane %v398_v46, 4  ;;  %v585_v51 = vsel %vm277_vm0, %v584_v39, %v559_v44  ;;  %v575_v53 = vsel %vm277_vm0, %v567_v38, %v574_v45  ;;  %v430_v57 = vsel %vm277_vm0, %v414_v40, %v429_v47 }
  0xcd   : > { %v2010_v55 = vperm.slane %v585_v51, %v1840_v28  ;;  %v583_v56 = vperm.slane %v575_v53, %v1840_v28  ;;  %v586_v58 = vrot.slane %v559_v44, 4  ;;  %v438_v0 = vperm.slane %v430_v57, %v1840_v28 }
  0xce   : > { %v2014_v59 = vpop.permute.xlu1 %1206  ;;  %v418_v62 = vsel %vm277_vm0, %v410_v49, %v417_v50  ;;  %v2017_v63 = vpop.permute.xlu0 %811  ;;  %v2043_v11 = vperm.slane %v573_v7, %v1840_v28  ;;  %v2049_v18 = vperm.slane %v428_v8, %v1840_v28  ;;  %v416_v6 = vsel %vm277_vm0, %v415_v24, %v398_v46 }
  0xcf   : > { %617 = vrot.lane.b32.xlu1 %v2010_v55, %s1716_s12  ;;  %609 = vrot.lane.b32.xlu2 %v583_v56, %s1717_s21  ;;  %v2024_v1 = vperm.slane %v418_v62, %v1840_v28  ;;  %v587_v4 = vsel %vm277_vm0, %v571_v23, %v586_v58  ;;  %v445_v5 = vrot.slane %v438_v0, 4  ;;  %v2031_v9 = vpop.permute.xlu2 %935  ;;  %v1224_v25 = vrot.slane %v2014_v59, 4 }
  0xd0   : > { %v2035_v16 = vperm.slane %v587_v4, %v1840_v28  ;;  %v596_v23 = vrot.slane %v2043_v11, 4  ;;  %v2083_v34 = vperm.slane %v416_v6, %v1840_v28  ;;  %v598_v37 = vrot.slane %v583_v56, 4 }
  0xd1   : > { %452 = vrot.lane.b32.xlu0 %v2024_v1, %s1717_s21  ;;  %v446_v19 = vsel %vm277_vm0, 0.0, %v445_v5  ;;  %v1225_v12 = vsel %vm277_vm0, %v1224_v25, %v1984_v21  ;;  %v1119_v38 = vsel %vm277_vm0, %v1118_v35, %v2078_v60  ;;  %v600_v48 = vrot.slane %v2010_v55, 4 }
  0xd2   : > { %v597_v32 = vsel %vm277_vm0, 0.0, %v596_v23  ;;  %v1231_v36 = vperm.slane %v1225_v12, %v1820_v13  ;;  %v439_v61 = vrot.slane %v2083_v34, 4  ;;  %v599_v45 = vsel %vm277_vm0, 0.0, %v598_v37 }
  0xd3   : > { %v441_v53 = vrot.slane %v2024_v1, 4  ;;  %v601_v55 = vsel %vm277_vm0, 0.0, %v600_v48  ;;  %v602_v5 = vrot.slane %v2035_v16, 4  ;;  %v443_v7 = vrot.slane %v2049_v18, 4 }
  0xd4   : > { %v1236_v43 = vrot.slane %v1231_v36, 4  ;;  %v440_v40 = vsel %vm277_vm0, 0.0, %v439_v61  ;;  %v1125_v24 = vperm.slane %v1119_v38, %v1840_v28 }
  0xd5   : > { %v442_v2 = vsel %vm277_vm0, 0.0, %v441_v53 }
  0xd6   : > { %v2037_v17 = vpop.permute.xlu1 %941  ;;  %v2040_v20 = vpop.permute.xlu0 %809  ;;  %v1134_v35 = vrot.slane %v1125_v24, 4 }
  0xd7   : > { %625 = vrot.lane.b32.xlu1 %v2035_v16, %s1718_s22  ;;  %472 = vrot.lane.b32.xlu2 %v446_v19, %s1723_s28  ;;  %v2065_v30 = vpop.permute.xlu2 %1334  ;;  %v817_v8 = vrot.slane %v2040_v20, 4  ;;  %v2133_v19 = vperm.slane %v1107_v22, %v1840_v28  ;;  %v603_v16 = vsel %vm277_vm0, 0.0, %v602_v5  ;;  %v1120_v5 = vrot.slane %v2078_v60, 4 }
  0xd9   : > { %460 = vrot.lane.b32.xlu0 %v2049_v18, %s1716_s12  ;;  %v959_v18 = vrot.slane %v2037_v17, 4  ;;  %v1130_v22 = vrot.slane %v2133_v19, 4 }
  0xde   : > { %v2068_v31 = vpop.permute.xlu1 %805  ;;  %v2080_v33 = vpop.permute.xlu0 %1204 }
  0xdf   : > { %605 = vrot.lane.b32.xlu1 %v597_v32, %s1720_s24  ;;  %1143 = vrot.lane.b32.xlu2 %v2060_v26, %s1717_s21  ;;  %v1212_v39 = vrot.slane %v2080_v33, 4  ;;  %v745_v42 = vpop.permute.xlu2 %744  ;;  %v818_v25 = vsel %vm277_vm0, %v817_v8, %v2068_v31  ;;  %v832_v32 = vsel %vm277_vm0, %v2017_v63, %v831_v10  ;;  %v819_v37 = vrot.slane %v2068_v31, 4 }
  0xe0   : > { %v771_v50 = vsel %vm361_vm3, %v1936_v27, %v745_v42  ;;  %v824_v38 = vperm.slane %v818_v25, %v1820_v13  ;;  %v2157_v61 = vperm.slane %v832_v32, %v1820_v13  ;;  %v960_v42 = vsel %vm277_vm0, %v959_v18, %v2007_v54 }
  0xe1   : > { %468 = vrot.lane.b32.xlu0 %v438_v0, %s1718_s22  ;;  %v829_v0 = vrot.slane %v2017_v63, 4  ;;  %v1131_v63 = vsel %vm277_vm0, 0.0, %v1130_v22 }
  0xe2   : > { %v853_v48 = vrot.slane %v2157_v61, 4 }
  0xe3   : > { %v830_v4 = vsel %vm277_vm0, %v829_v0, %v1971_v41  ;;  %v444_v41 = vsel %vm277_vm0, 0.0, %v443_v7 }
  0xe4   : > { %v836_v23 = vperm.slane %v830_v4, %v1820_v13 }
  0xe6   : > { %v2092_v44 = vpop.permute.xlu1 %1200  ;;  %v2120_v1 = vpop.permute.xlu0 %939  ;;  %v841_v12 = vrot.slane %v836_v23, 4 }
  0xe7   : > { %v1213_v46 = vsel %vm277_vm0, %v1212_v39, %v2092_v44  ;;  %613 = vrot.lane.b32.xlu1 %v599_v45, %s1722_s27  ;;  %v749_v56 = vpop.permute.xlu2 %748  ;;  %v947_v14 = vrot.slane %v2120_v1, 4  ;;  %v1135_v45 = vsel %vm277_vm0, 0.0, %v1134_v35  ;;  %v1214_v53 = vrot.slane %v2092_v44, 4 }
  0xe8   : > { %v1219_v47 = vperm.slane %v1213_v46, %v1820_v13  ;;  %v2111_v62 = vsel %vm363_vm4, %v771_v50, %v749_v56  ;;  %v820_v46 = vsel %vm277_vm0, %v2040_v20, %v819_v37 }
  0xe9   : > { %448 = vrot.lane.b32.xlu0 %v440_v40, %s1720_s24  ;;  %v948_v6 = vsel %vm277_vm0, %v947_v14, %v2031_v9  ;;  %v2180_v20 = vperm.slane %v820_v46, %v1820_v13  ;;  %v1121_v14 = vsel %vm277_vm0, %v2063_v29, %v1120_v5 }
  0xea   : > { %v1237_v49 = vsel %vm277_vm0, %v1236_v43, %v1219_v47  ;;  %v1238_v57 = vrot.slane %v1219_v47, 4  ;;  %v954_v39 = vperm.slane %v948_v6, %v1820_v13  ;;  %v1226_v43 = vrot.slane %v1984_v21, 4 }
  0xeb   : > { %v2106_v51 = vperm.slane %v1237_v49, %v1840_v28  ;;  %v966_v47 = vperm.slane %v960_v42, %v1820_v13  ;;  %v1132_v21 = vrot.slane %v2060_v26, 4  ;;  %v854_v0 = vsel %vm277_vm0, %v853_v48, %v2180_v20 }
  0xec   : > { %v1239_v3 = vsel %vm277_vm0, %v1231_v36, %v1238_v57  ;;  %v741_v36 = vrot.slane %v1958_v52, 4  ;;  %v842_v52 = vsel %vm277_vm0, %v841_v12, %v824_v38  ;;  %v973_v40 = vrot.slane %v954_v39, 4 }
  0xed   : > { %v1260_v58 = vrot.slane %v2106_v51, 4  ;;  %v2130_v15 = vperm.slane %v1239_v3, %v1840_v28  ;;  %v2174_v49 = vperm.slane %v842_v52, %v1840_v28  ;;  %v1227_v50 = vsel %vm277_vm0, %v2014_v59, %v1226_v43 }
  0xee   : > { %v742_v31 = vsel %vm277_vm0, 0.0, %v741_v36  ;;  %v974_v56 = vsel %vm277_vm0, %v966_v47, %v973_v40  ;;  %v1235_v57 = vperm.slane %v1227_v50, %v1820_v13  ;;  %v860_v44 = vperm.slane %v854_v0, %v1840_v28  ;;  %v1337_v25 = vpop.permute.xlu0 %1336  ;;  %v1333_v12 = vpop.permute.xlu1 %1332 }
  0xef   : > { %621 = vrot.lane.b32.xlu1 %v601_v55, %s1724_s29  ;;  %v1261_v27 = vsel %vm277_vm0, 0.0, %v1260_v58  ;;  %v1133_v58 = vsel %vm277_vm0, 0.0, %v1132_v21  ;;  %v865_v26 = vrot.slane %v2174_v49, 4  ;;  %v2190_v59 = vperm.slane %v974_v56, %v1840_v28  ;;  %v2230_v52 = vpop.permute.xlu2 %752 }
  0xf0   : > { %1269 = vrot.lane.b32.xlu2 %v1261_v27, %s1720_s24  ;;  %v1215_v55 = vsel %vm277_vm0, %v2080_v33, %v1214_v53  ;;  %v971_v27 = vrot.slane %v966_v47, 4  ;;  %v1248_v3 = vrot.slane %v1235_v57, 4  ;;  %v869_v8 = vrot.slane %v860_v44, 4 }
  0xf1   : > { %456 = vrot.lane.b32.xlu0 %v442_v2, %s1722_s27  ;;  %v843_v2 = vrot.slane %v824_v38, 4  ;;  %v866_v4 = vsel %vm277_vm0, 0.0, %v865_v26  ;;  %v1223_v7 = vperm.slane %v1215_v55, %v1820_v13  ;;  %v1354_v22 = vrot.slane %v1337_v25, 4 }
  0xf2   : > { %v972_v33 = vsel %vm277_vm0, %v971_v27, %v954_v39  ;;  %v870_v60 = vsel %vm277_vm0, 0.0, %v869_v8  ;;  %v1356_v21 = vrot.slane %v1333_v12, 4  ;;  %v997_v8 = vrot.slane %v2190_v59, 4 }
  0xf3   : > { %v844_v10 = vsel %vm277_vm0, %v836_v23, %v843_v2  ;;  %v2208_v18 = vperm.slane %v972_v33, %v1840_v28  ;;  %v1250_v36 = vrot.slane %v1223_v7, 4  ;;  %v1355_v38 = vsel %vm277_vm0, %v1354_v22, %v1333_v12 }
  0xf4   : > { %v852_v6 = vperm.slane %v844_v10, %v1840_v28  ;;  %v1357_v0 = vsel %vm277_vm0, %v1337_v25, %v1356_v21 }
  0xf5   : > { %v995_v29 = vrot.slane %v2208_v18, 4  ;;  %v1251_v43 = vsel %vm277_vm0, %v1235_v57, %v1250_v36  ;;  %v1129_v57 = vperm.slane %v1121_v14, %v1840_v28  ;;  %v1365_v2 = vperm.slane %v1357_v0, %v1820_v13 }
  0xf6   : > { %v867_v32 = vrot.slane %v852_v6, 4  ;;  %v1331_v42 = vpop.permute.xlu0 %1330  ;;  %v1259_v46 = vperm.slane %v1251_v43, %v1840_v28  ;;  %v2286_v22 = vpop.permute.xlu1 %764 }
  0xf7   : > { %629 = vrot.lane.b32.xlu1 %v603_v16, %s1723_s28  ;;  %v1249_v16 = vsel %vm277_vm0, %v1248_v3, %v1223_v7  ;;  %v996_v35 = vsel %vm277_vm0, 0.0, %v995_v29  ;;  %v1344_v56 = vrot.slane %v1331_v42, 4  ;;  %v2249_v26 = vpop.permute.xlu2 %756  ;;  %v1378_v33 = vrot.slane %v1365_v2, 4 }
  0xf8   : > { %1273 = vrot.lane.b32.xlu2 %v2130_v15, %s1717_s21  ;;  %v868_v39 = vsel %vm277_vm0, 0.0, %v867_v32  ;;  %v1266_v53 = vrot.slane %v1259_v46, 4 }
  0xf9   : > { %464 = vrot.lane.b32.xlu0 %v444_v41, %s1724_s29  ;;  %v1255_v41 = vperm.slane %v1249_v16, %v1840_v28  ;;  %v1345_v3 = vsel %vm277_vm0, %v2065_v30, %v1344_v56 }
  0xfa   : > { %v1267_v27 = vsel %vm277_vm0, 0.0, %v1266_v53  ;;  %v1353_v5 = vperm.slane %v1345_v3, %v1820_v13 }
  0xfb   : > { %v1264_v23 = vrot.slane %v1255_v41, 4 }
  0xfd   : > { %v1265_v37 = vsel %vm277_vm0, 0.0, %v1264_v23 }
  0xff   : > { %1139 = vrot.lane.b32.xlu1 %v1131_v63, %s1720_s24  ;;  %v2226_v63 = vperm.slane %v1355_v38, %v1820_v13  ;;  %v2273_v25 = vpop.permute.xlu2 %760 }
 0x100   : > { %1155 = vrot.lane.b32.xlu2 %v1135_v45, %s1724_s29 }
 0x101   : > { %768 = vrot.lane.b32.xlu0 %v742_v31, %s1723_s28  ;;  %v1262_v31 = vrot.slane %v2130_v15, 4  ;;  %v1366_v47 = vrot.slane %v2226_v63, 4  ;;  %v961_v15 = vrot.slane %v2007_v54, 4  ;;  %v1136_v54 = vrot.slane %v1129_v57, 4 }
 0x103   : > { %v1263_v48 = vsel %vm277_vm0, 0.0, %v1262_v31  ;;  %v962_v55 = vsel %vm277_vm0, %v2037_v17, %v961_v15  ;;  %v1137_v7 = vsel %vm277_vm0, 0.0, %v1136_v54 }
 0x104   : > { %v970_v17 = vperm.slane %v962_v55, %v1820_v13 }
 0x106   : > { %v983_v10 = vrot.slane %v970_v17, 4 }
 0x107   : > { %1147 = vrot.lane.b32.xlu1 %v1133_v58, %s1722_s27 }
 0x108   : > { %1008 = vrot.lane.b32.xlu2 %v2190_v59, %s1717_s21  ;;  %v998_v59 = vsel %vm277_vm0, 0.0, %v997_v8 }
 0x109   : > { %874 = vrot.lane.b32.xlu0 %v866_v4, %s1720_s24 }
 0x10f   : > { %1151 = vrot.lane.b32.xlu1 %v1125_v24, %s1716_s12  ;;  %v1342_v24 = vrot.slane %v2065_v30, 4  ;;  %v855_v30 = vrot.slane %v2180_v20, 4 }
 0x110   : > { %890 = vrot.lane.b32.xlu2 %v870_v60, %s1724_s29  ;;  %v1380_v60 = vrot.slane %v1353_v5, 4 }
 0x111   : > { %878 = vrot.lane.b32.xlu0 %v852_v6, %s1717_s21  ;;  %v1343_v45 = vsel %vm277_vm0, %v1342_v24, %v1331_v42  ;;  %v856_v20 = vsel %vm277_vm0, %v2157_v61, %v855_v30 }
 0x112   : > { %v2236_v40 = vperm.slane %v1343_v45, %v1820_v13  ;;  %v864_v32 = vperm.slane %v856_v20, %v1840_v28 }
 0x114   : > { %v1367_v50 = vsel %vm277_vm0, %v1366_v47, %v2236_v40  ;;  %v1368_v42 = vrot.slane %v2236_v40, 4 }
 0x115   : > { %v2247_v58 = vperm.slane %v1367_v50, %v1840_v28 }
 0x117   : > { %1004 = vrot.lane.b32.xlu1 %v996_v35, %s1720_s24  ;;  %v1390_v4 = vrot.slane %v2247_v58, 4 }
 0x118   : > { %1285 = vrot.lane.b32.xlu2 %v1265_v37, %s1724_s29  ;;  %v871_v37 = vrot.slane %v864_v32, 4 }
 0x119   : > { %882 = vrot.lane.b32.xlu0 %v868_v39, %s1722_s27  ;;  %v1391_v14 = vsel %vm277_vm0, 0.0, %v1390_v4 }
 0x11a   : > { %v872_v45 = vsel %vm277_vm0, 0.0, %v871_v37 }
 0x11f   : > { %886 = vrot.lane.b32.xlu1 %v860_v44, %s1716_s12  ;;  %v949_v44 = vrot.slane %v2031_v9, 4 }
 0x120   : > { %1289 = vrot.lane.b32.xlu2 %v1259_v46, %s1718_s22 }
 0x121   : > { %1277 = vrot.lane.b32.xlu0 %v1263_v48, %s1722_s27  ;;  %v950_v9 = vsel %vm277_vm0, %v2120_v1, %v949_v44  ;;  %v1379_v1 = vsel %vm277_vm0, %v1378_v33, %v1353_v5  ;;  %v1369_v48 = vsel %vm277_vm0, %v2226_v63, %v1368_v42 }
 0x122   : > { %v958_v16 = vperm.slane %v950_v9, %v1820_v13  ;;  %v1381_v13 = vsel %vm277_vm0, %v1365_v2, %v1380_v60  ;;  %v1377_v40 = vperm.slane %v1369_v48, %v1840_v28  ;;  %v773_v60 = vsel %vm365_vm5, %v2111_v62, %v2230_v52 }
 0x123   : > { %v1389_v12 = vperm.slane %v1381_v13, %v1840_v28  ;;  %v774_v20 = vsel %vm367_vm6, %v773_v60, %v2249_v26 }
 0x124   : > { %v984_v6 = vsel %vm277_vm0, %v983_v10, %v958_v16  ;;  %v985_v23 = vrot.slane %v958_v16, 4  ;;  %v1392_v53 = vrot.slane %v1377_v40, 4  ;;  %v775_v62 = vsel %vm369_vm7, %v774_v20, %v2273_v25 }
 0x125   : > { %v990_v29 = vperm.slane %v984_v6, %v1840_v28  ;;  %v1396_v61 = vrot.slane %v1389_v12, 4 }
 0x126   : > { %v986_v24 = vsel %vm277_vm0, %v970_v17, %v985_v23  ;;  %v1393_v0 = vsel %vm277_vm0, 0.0, %v1392_v53  ;;  %v776_v23 = vsel %vm371_vm8, %v775_v62, %v2286_v22 }
 0x127   : > { %1281 = vrot.lane.b32.xlu1 %v1255_v41, %s1716_s12  ;;  %v1385_v41 = vperm.slane %v1379_v1, %v1840_v28  ;;  %v999_v36 = vrot.slane %v990_v29, 4  ;;  %v994_v39 = vperm.slane %v986_v24, %v1840_v28  ;;  %v1397_v43 = vsel %vm277_vm0, 0.0, %v1396_v61 }
 0x128   : > { %1293 = vrot.lane.b32.xlu2 %v1267_v27, %s1723_s28 }
 0x129   : > { %1159 = vrot.lane.b32.xlu0 %v1129_v57, %s1718_s22  ;;  %v610_v35 = vpop.permute.xlu2 %609  ;;  %v1000_v38 = vsel %vm277_vm0, 0.0, %v999_v36  ;;  %v1001_v46 = vrot.slane %v994_v39, 4  ;;  %v1394_v27 = vrot.slane %v1385_v41, 4 }
 0x12b   : > { %v1002_v50 = vsel %vm277_vm0, 0.0, %v1001_v46  ;;  %v1395_v28 = vsel %vm277_vm0, 0.0, %v1394_v27 }
 0x12f   : > { %1163 = vrot.lane.b32.xlu1 %v1137_v7, %s1723_s28 }
 0x130   : > { %1399 = vrot.lane.b32.xlu2 %v1391_v14, %s1720_s24 }
 0x131   : > { %1012 = vrot.lane.b32.xlu0 %v998_v59, %s1722_s27  ;;  %v473_v21 = vpop.permute.xlu2 %472 }
 0x137   : > { %1016 = vrot.lane.b32.xlu1 %v990_v29, %s1716_s12 }
 0x138   : > { %1411 = vrot.lane.b32.xlu2 %v1385_v41, %s1716_s12 }
 0x139   : > { %894 = vrot.lane.b32.xlu0 %v864_v32, %s1718_s22  ;;  %v1144_v57 = vpop.permute.xlu2 %1143 }
 0x13f   : > { %1020 = vrot.lane.b32.xlu1 %v1000_v38, %s1724_s29 }
 0x140   : > { %1423 = vrot.lane.b32.xlu2 %v1397_v43, %s1723_s28 }
 0x141   : > { %v618_v31 = vpop.permute.xlu1 %617  ;;  %898 = vrot.lane.b32.xlu0 %v872_v45, %s1723_s28 }
 0x143   : > { %v453_v47 = vpop.permute.xlu0 %452 }
 0x147   : > { %1028 = vrot.lane.b32.xlu1 %v1002_v50, %s1723_s28 }
 0x149   : > { %v626_v15 = vpop.permute.xlu1 %625  ;;  %1024 = vrot.lane.b32.xlu0 %v994_v39, %s1718_s22 }
 0x14a   : > { %v1270_v54 = vpop.permute.xlu2 %1269 }
 0x14b   : > { %v461_v56 = vpop.permute.xlu0 %460  ;;  %v1296_v22 = vsel %vm361_vm3, %v2106_v51, %v1270_v54 }
 0x14f   : > { %1407 = vrot.lane.b32.xlu1 %v1393_v0, %s1722_s27 }
 0x151   : > { %v606_v55 = vpop.permute.xlu1 %605  ;;  %1403 = vrot.lane.b32.xlu0 %v1377_v40, %s1717_s21 }
 0x152   : > { %v632_v3 = vsel %vm361_vm3, %v2043_v11, %v606_v55  ;;  %v1274_v4 = vpop.permute.xlu2 %1273 }
 0x153   : > { %v469_v63 = vpop.permute.xlu0 %468  ;;  %v633_v17 = vsel %vm363_vm4, %v632_v3, %v610_v35  ;;  %v267_v3 = vld [vmem:[%s2458_s1] sm:$0xff] }
 0x154   : > { %1572 = vmatmul.msk.f32.vlgmr.msra.gmra.mxu1 %vm482_vm11, %v267_v3 }
 0x157   : > { %1419 = vrot.lane.b32.xlu1 %v1389_v12, %s1718_s22 }
 0x159   : > { %v614_v44 = vpop.permute.xlu1 %613  ;;  %1415 = vrot.lane.b32.xlu0 %v1395_v28, %s1724_s29 }
 0x15a   : > { %v634_v7 = vsel %vm365_vm5, %v633_v17, %v614_v44  ;;  %v1156_v59 = vpop.permute.xlu2 %1155  ;;  %v268_v44 = vld [vmem:[%s2458_s1 + $0x8] sm:$0xff]  ;;  %v273_v17 = vld [vmem:[%s2458_s1 + $0x30] sm:$0xff] }
 0x15b   : > { %v449_v2 = vpop.permute.xlu0 %448  ;;  %v635_v33 = vsel %vm367_vm6, %v634_v7, %v618_v31  ;;  %v1297_v31 = vsel %vm363_vm4, %v1296_v22, %v1274_v4 }
 0x15c   : > { %v475_v9 = vsel %vm361_vm3, %v2083_v34, %v449_v2  ;;  %v270_v2 = vld [vmem:[%s2458_s1 + $0x18] sm:$0xff] }
 0x15d   : > { %v476_v10 = vsel %vm363_vm4, %v475_v9, %v453_v47  ;;  %v274_v9 = vld [vmem:[%s2458_s1 + $0x38] sm:$0xff] }
 0x161   : > { %v622_v5 = vpop.permute.xlu1 %621 }
 0x162   : > { %v636_v14 = vsel %vm369_vm7, %v635_v33, %v622_v5  ;;  %v2340_v12 = vpop.permute.xlu2 %1008 }
 0x163   : > { %v457_v8 = vpop.permute.xlu0 %456  ;;  %v637_v11 = vsel %vm371_vm8, %v636_v14, %v626_v15 }
 0x164   : > { %v477_v30 = vsel %vm365_vm5, %v476_v10, %v457_v8  ;;  %v1460_v10 = vld [vmem:[%s2459_s2] sm:$0xff] }
 0x165   : > { %v478_v34 = vsel %vm367_vm6, %v477_v30, %v461_v56 }
 0x169   : > { %v630_v16 = vpop.permute.xlu1 %629 }
 0x16a   : > { %v638_v1 = vsel %vm373_vm9, %v637_v11, %v630_v16  ;;  %v891_v61 = vpop.permute.xlu2 %890  ;;  %v1725_v16 = vmov 0  }
 0x16b   : > { %1573 = vmatpush.msk.msra.mxu2 %vm486_vm10, %v638_v1  ;;  %v465_v6 = vpop.permute.xlu0 %464  ;;  %1657 = vset.pattern.permute.xlu0 %v1725_v16 }
 0x16c   : > { %v479_v41 = vsel %vm369_vm7, %v478_v34, %v465_v6  ;;  %1463 = vperm.xlu0 %1657, %v1460_v10  }
 0x16d   : > { %v480_v13 = vsel %vm371_vm8, %v479_v41, %v469_v63 }
 0x16e   : > { %v481_v29 = vsel %vm373_vm9, %v480_v13, %v473_v21 }
 0x16f   : > { %1569 = vmatpush.msk.msra.mxu0 %vm486_vm10, %v481_v29 }
 0x170   : > { %1570 = vmatmul.msk.f32.vlgmr.msra.gmra.mxu0 %vm482_vm11, %v268_v44 }
 0x171   : > { %v1140_v52 = vpop.permute.xlu1 %1139 }
 0x172   : > { %v1286_v38 = vpop.permute.xlu2 %1285  ;;  %v1166_v46 = vsel %vm361_vm3, %v2133_v19, %v1140_v52 }
 0x173   : > { %v769_v32 = vpop.permute.xlu0 %768  ;;  %v1167_v50 = vsel %vm363_vm4, %v1166_v46, %v1144_v57  ;;  %v269_v57 = vld [vmem:[%s2458_s1 + $0x10] sm:$0xff] }
 0x174   : > { %v777_v35 = vsel %vm373_vm9, %v776_v23, %v769_v32  ;;  %1574 = vmatmul.msk.f32.vlgmr.msra.gmra.mxu2 %vm482_vm11, %v269_v57 }
 0x175   : > { %1575 = vmatpush.msk.msra.mxu3 %vm486_vm10, %v777_v35 }
 0x176   : > { %1576 = vmatmul.msk.f32.vlgmr.msra.gmra.mxu3 %vm482_vm11, %v270_v2 }
 0x179   : > { %v1148_v26 = vpop.permute.xlu1 %1147 }
 0x17a   : > { %v1290_v43 = vpop.permute.xlu2 %1289  ;;  %v1168_v53 = vsel %vm365_vm5, %v1167_v50, %v1148_v26 }
 0x17b   : > { %v875_v36 = vpop.permute.xlu0 %874 }
 0x17c   : > { %v901_v7 = vsel %vm361_vm3, %v2174_v49, %v875_v36 }
 0x181   : > { %v1152_v24 = vpop.permute.xlu1 %1151 }
 0x182   : > { %v1294_v56 = vpop.permute.xlu2 %1293  ;;  %v1169_v0 = vsel %vm367_vm6, %v1168_v53, %v1152_v24 }
 0x183   : > { %v879_v37 = vpop.permute.xlu0 %878  ;;  %v1170_v19 = vsel %vm369_vm7, %v1169_v0, %v1156_v59  ;;  %v271_v59 = vld [vmem:[%s2458_s1 + $0x20] sm:$0xff] }
 0x184   : > { %v902_v8 = vsel %vm363_vm4, %v901_v7, %v879_v37 }
 0x189   : > { %v1005_v39 = vpop.permute.xlu1 %1004 }
 0x18a   : > { %v1031_v34 = vsel %vm361_vm3, %v2208_v18, %v1005_v39  ;;  %v1400_v41 = vpop.permute.xlu2 %1399  ;;  %v272_v18 = vld [vmem:[%s2458_s1 + $0x28] sm:$0xff] }
 0x18b   : > { %v883_v42 = vpop.permute.xlu0 %882  ;;  %v1032_v6 = vsel %vm363_vm4, %v1031_v34, %v2340_v12  ;;  %v1426_v36 = vsel %vm361_vm3, %v2247_v58, %v1400_v41 }
 0x18c   : > { %v903_v33 = vsel %vm365_vm5, %v902_v8, %v883_v42 }
 0x191   : > { %v887_v25 = vpop.permute.xlu1 %886 }
 0x192   : > { %v904_v14 = vsel %vm367_vm6, %v903_v33, %v887_v25  ;;  %v1412_v35 = vpop.permute.xlu2 %1411 }
 0x193   : > { %v1278_v45 = vpop.permute.xlu0 %1277  ;;  %v905_v49 = vsel %vm369_vm7, %v904_v14, %v891_v61 }
 0x194   : > { %v1298_v47 = vsel %vm365_vm5, %v1297_v31, %v1278_v45  ;;  %v275_v45 = vld [vmem:[%s2458_s1 + $0x40] sm:$0xff] }
 0x199   : > { %v1282_v48 = vpop.permute.xlu1 %1281 }
 0x19a   : > { %v1299_v21 = vsel %vm367_vm6, %v1298_v47, %v1282_v48  ;;  %v1424_v25 = vpop.permute.xlu2 %1423 }
 0x19b   : > { %v1300_v40 = vsel %vm369_vm7, %v1299_v21, %v1286_v38  ;;  %v1160_v15 = vpop.permute.xlu0 %1159 }
 0x19c   : > { %v1301_v51 = vsel %vm371_vm8, %v1300_v40, %v1290_v43  ;;  %v1171_v63 = vsel %vm371_vm8, %v1170_v19, %v1160_v15 }
 0x19d   : > { %v1302_v55 = vsel %vm373_vm9, %v1301_v51, %v1294_v56 }
 0x19e   : > { %1583 = vmatpush.msk.msrb.mxu3 %vm486_vm10, %v1302_v55 }
 0x19f   : > { %1584 = vmatmul.msk.f32.vlgmr.msrb.gmra.mxu3 %vm482_vm11, %v274_v9 }
 0x1a1   : > { %v1164_v27 = vpop.permute.xlu1 %1163 }
 0x1a2   : > { %v1172_v54 = vsel %vm373_vm9, %v1171_v63, %v1164_v27 }
 0x1a3   : > { %1581 = vmatpush.msk.msrb.mxu2 %vm486_vm10, %v1172_v54  ;;  %v1013_v28 = vpop.permute.xlu0 %1012 }
 0x1a4   : > { %1582 = vmatmul.msk.f32.vlgmr.msrb.gmra.mxu2 %vm482_vm11, %v273_v17  ;;  %v1033_v20 = vsel %vm365_vm5, %v1032_v6, %v1013_v28 }
 0x1a9   : > { %v1017_v4 = vpop.permute.xlu1 %1016 }
 0x1aa   : > { %v1034_v29 = vsel %vm367_vm6, %v1033_v20, %v1017_v4 }
 0x1ab   : > { %v895_v5 = vpop.permute.xlu0 %894 }
 0x1ac   : > { %v906_v11 = vsel %vm371_vm8, %v905_v49, %v895_v5 }
 0x1b1   : > { %v1021_v30 = vpop.permute.xlu1 %1020 }
 0x1b2   : > { %v1035_v62 = vsel %vm369_vm7, %v1034_v29, %v1021_v30 }
 0x1b3   : > { %v899_v60 = vpop.permute.xlu0 %898 }
 0x1b4   : > { %v907_v1 = vsel %vm373_vm9, %v906_v11, %v899_v60 }
 0x1b5   : > { %1577 = vmatpush.msk.msrb.mxu0 %vm486_vm10, %v907_v1 }
 0x1b6   : > { %1578 = vmatmul.msk.f32.vlgmr.msrb.gmra.mxu0 %vm482_vm11, %v271_v59 }
 0x1b9   : > { %v1029_v13 = vpop.permute.xlu1 %1028 }
 0x1bb   : > { %v1025_v52 = vpop.permute.xlu0 %1024 }
 0x1bc   : > { %v1036_v23 = vsel %vm371_vm8, %v1035_v62, %v1025_v52 }
 0x1bd   : > { %v1037_v32 = vsel %vm373_vm9, %v1036_v23, %v1029_v13 }
 0x1be   : > { %1579 = vmatpush.msk.msrb.mxu1 %vm486_vm10, %v1037_v32 }
 0x1bf   : > { %1580 = vmatmul.msk.f32.vlgmr.msrb.gmra.mxu1 %vm482_vm11, %v272_v18 }
 0x1c1   : > { %v1408_v12 = vpop.permute.xlu1 %1407 }
 0x1c3   : > { %v1404_v26 = vpop.permute.xlu0 %1403 }
 0x1c4   : > { %v1427_v61 = vsel %vm363_vm4, %v1426_v36, %v1404_v26 }
 0x1c5   : > { %v1428_v24 = vsel %vm365_vm5, %v1427_v61, %v1408_v12 }
 0x1c6   : > { %v1429_v37 = vsel %vm367_vm6, %v1428_v24, %v1412_v35 }
 0x1c9   : > { %v1420_v39 = vpop.permute.xlu1 %1419 }
 0x1cb   : > { %v1416_v38 = vpop.permute.xlu0 %1415 }
 0x1cc   : > { %v1430_v42 = vsel %vm369_vm7, %v1429_v37, %v1416_v38 }
 0x1cd   : > { %v1431_v43 = vsel %vm371_vm8, %v1430_v42, %v1420_v39 }
 0x1ce   : > { %v1432_v58 = vsel %vm373_vm9, %v1431_v43, %v1424_v25 }
 0x1cf   : > { %1585 = vmatpush.msk.msra.mxu0 %vm486_vm10, %v1432_v58 }
 0x1d0   : > { %1586 = vmatmul.msk.f32.vlgmr.msra.gmra.mxu0 %vm482_vm11, %v275_v45 }
 0x1d1   : > { %v533_v22 = vpop.f32.mrf.mxu1 }
 0x1de   : > { %v1464_v27 = vpop.permute.xlu0 %1463 }
 0x1ed   : > { %v507_v31 = vpop.f32.mrf.mxu0 }
 0x1ee   : > { %v534_v46 = vadd.f32 %v533_v22, %v507_v31 }
 0x1f7   : > { %v662_v47 = vpop.f32.mrf.mxu2 }
 0x1f8   : > { %v665_v48 = vadd.f32 %v662_v47, %v534_v46 }
 0x1f9   : > { %v801_v21 = vpop.f32.mrf.mxu3 }
 0x1fa   : > { %v804_v50 = vadd.f32 %v801_v21, %v665_v48 }
 0x222   : > { %v1326_v55 = vpop.f32.mrf.mxu3 }
 0x227   : > { %v1196_v51 = vpop.f32.mrf.mxu2 }
 0x233   : > { %v931_v40 = vpop.f32.mrf.mxu0 }
 0x234   : > { %v934_v15 = vadd.f32 %v931_v40, %v804_v50 }
 0x23c   : > { %v1061_v53 = vpop.f32.mrf.mxu1 }
 0x23d   : > { %v1064_v56 = vadd.f32 %v1061_v53, %v934_v15 }
 0x23f   : > { %v1199_v0 = vadd.f32 %v1196_v51, %v1064_v56 }
 0x241   : > { %v1329_v19 = vadd.f32 %v1326_v55, %v1199_v0 }
 0x24d   : > { %v1456_v63 = vpop.f32.mrf.mxu0 }
 0x24e   : > { %v1459_v57 = vadd.f32 %v1456_v63, %v1329_v19 }
 0x250   : > { %v1466_v54 = vadd.f32 %v1464_v27, %v1459_v57 }
 0x252   : > { %1467 = vst [vmem:[%s258_s10] sm:$0xff] %v1466_v54 }
 0x253 PF: > { %s13_s18 = sadd.s32 1, %s1712_s18   ;;  %s2461_s12 = smov %s1692_s13 }
 0x254   : > { %p10_p12 = scmp.ge.s32.totalorder %s13_s18, 6   ;;  %s2462_s13 = smov %s1797_s25 }
 0x255   : > { %s2463_s14 = smov %s1704_s16  ;;  %s2464_s15 = smov %s1708_s17 }
 0x256   : > { %s2465_s16 = smov %s2468_s19  ;;  %s2466_s17 = smov %s2472_s20 }
 0x257   :  { %12 = sbr.rel (!%p10_p12) target bundleno = 4 (0x4), region = 105 }

</bundles_post_ra>
